<compile_context>
chip_gen: v5e
topology: v5e:2x2
jax: 0.10.0
libtpu: 0.0.40
codegen_flags: <defaults>
</compile_context>

<pallas_src>
import jax
import jax.numpy as jnp
from jax.experimental import pallas as pl
from jax.experimental.pallas import tpu as pltpu


def _softplus(x):
    # Numerically stable softplus; matches torch.nn.Softplus(beta=1,
    # threshold=20) within f32 tolerance.  exp/log go to the EUP slot.
    return jnp.maximum(x, 0.0) + jnp.log(1.0 + jnp.exp(-jnp.abs(x)))


def atom_update_kernel(atom_ref, bond_ref, glob_ref, adj_b_ref, adj_g_ref,
                       w1a_ref, w1b_ref, w1g_ref, b1_ref,
                       w2_ref, b2_ref, w3_ref, b3_ref,
                       out_ref):
    atom = atom_ref[0]                            # [N_A, FA]  bf16
    bond = bond_ref[0]                            # [N_B, FB]  bf16
    glob = glob_ref[0].astype(jnp.float32)        # [N_G, FG]  f32
    adj_b = adj_b_ref[0]                          # [N_A, N_B] bf16
    adj_g = adj_g_ref[0]                          # [N_A, N_G] f32

    # mean over incoming bond edges == row-normalized adjacency @ bond  (MXU)
    mean_b = jnp.dot(adj_b, bond, preferred_element_type=jnp.float32)

    # mean over incoming global edges: contraction length n_glob (~1-2), so do
    # it on the VPU (unrolled outer-product accumulate) instead of a padded
    # near-empty MXU matmul.
    n_glob = glob.shape[0]
    mean_g = adj_g[:, 0:1] * glob[0:1, :]
    for k in range(1, n_glob):
        mean_g = mean_g + adj_g[:, k:k + 1] * glob[k:k + 1, :]

    # first Linear on concat([atom, mean_b, mean_g], axis=1) done as split
    # matmuls (avoids an in-kernel concatenate); bf16 operands, f32 accumulate.
    h = (jnp.dot(atom, w1a_ref[...], preferred_element_type=jnp.float32)
         + jnp.dot(mean_b.astype(jnp.bfloat16), w1b_ref[...],
                   preferred_element_type=jnp.float32)
         + jnp.dot(mean_g.astype(jnp.bfloat16), w1g_ref[...],
                   preferred_element_type=jnp.float32)
         + b1_ref[...])
    h = _softplus(h)

    h = _softplus(jnp.dot(h.astype(jnp.bfloat16), w2_ref[...],
                          preferred_element_type=jnp.float32) + b2_ref[...])

    # last layer uses Identity activation; output channels are padded to a
    # lane-dense multiple of 128 (wrapper strips the padding).
    out_ref[0] = (jnp.dot(h.astype(jnp.bfloat16), w3_ref[...],
                          preferred_element_type=jnp.float32)
                  + b3_ref[...]).astype(out_ref.dtype)


@jax.jit
def atom_update_layer(atom_ft, bond_ft, glob_ft, adj_b, adj_g, params):
    """Batched AtomUpdateLayer forward.

    Args:
      atom_ft: [B, N_A, FA] master ('atom') node features.
      bond_ft: [B, N_B, FB] bond node features.
      glob_ft: [B, N_G, FG] global node features.
      adj_b:   [B, N_A, N_B] row-normalized bond->atom adjacency (fn.mean).
      adj_g:   [B, N_A, N_G] row-normalized global->atom adjacency
               (must be pre-normalized by in-degree, same as adj_b).
      params:  (w1, b1, w2, b2, w3, b3); w1 rows ordered [atom | bond | global]
               matching the torch concat order.
    Returns:
      [B, N_A, out_dim] float32.
    """
    w1, b1, w2, b2, w3, b3 = params
    B, n_atom, fa = atom_ft.shape
    _, n_bond, fb = bond_ft.shape
    _, n_glob, fg = glob_ft.shape
    h1 = w1.shape[1]
    h2 = w2.shape[1]
    out_dim = w3.shape[1]
    out_pad = pl.cdiv(out_dim, 128) * 128

    bf16, f32 = jnp.bfloat16, jnp.float32

    # split W1 rows to match the feature-concat order [atom | bond | global]
    w1a = w1[:fa].astype(bf16)
    w1b = w1[fa:fa + fb].astype(bf16)
    w1g = w1[fa + fb:].astype(bf16)
    w2c = w2.astype(bf16)
    # pad the last layer to a lane-dense (multiple-of-128) stored output width
    w3p = jnp.pad(w3, ((0, 0), (0, out_pad - out_dim))).astype(bf16)
    b3p = jnp.pad(b3, (0, out_pad - out_dim)).astype(f32).reshape(1, -1)

    inputs = (
        atom_ft.astype(bf16), bond_ft.astype(bf16), glob_ft.astype(bf16),
        adj_b.astype(bf16), adj_g.astype(f32),
        w1a, w1b, w1g, b1.astype(f32).reshape(1, -1),
        w2c, b2.astype(f32).reshape(1, -1),
        w3p, b3p,
    )

    per_graph = lambda shape: pl.BlockSpec((1,) + shape, lambda i: (i, 0, 0))
    resident = lambda shape: pl.BlockSpec(shape, lambda i: (0, 0))

    grid_spec = pltpu.PrefetchScalarGridSpec(
        num_scalar_prefetch=0,
        grid=(B,),
        in_specs=[
            per_graph((n_atom, fa)),       # atom_ft   (pipelined per graph)
            per_graph((n_bond, fb)),       # bond_ft
            per_graph((n_glob, fg)),       # glob_ft
            per_graph((n_atom, n_bond)),   # adj_b
            per_graph((n_atom, n_glob)),   # adj_g
            resident((fa, h1)),            # w1a       (VMEM-resident weights)
            resident((fb, h1)),            # w1b
            resident((fg, h1)),            # w1g
            resident((1, h1)),             # b1
            resident((h1, h2)),            # w2
            resident((1, h2)),             # b2
            resident((h2, out_pad)),       # w3 (lane-dense padded)
            resident((1, out_pad)),        # b3
        ],
        out_specs=pl.BlockSpec((1, n_atom, out_pad), lambda i: (i, 0, 0)),
    )

    out = pl.pallas_call(
        atom_update_kernel,
        out_shape=jax.ShapeDtypeStruct((B, n_atom, out_pad), jnp.float32),
        grid_spec=grid_spec,
        compiler_params=pltpu.CompilerParams(
            dimension_semantics=("parallel",)),
    )(*inputs)

    return out[..., :out_dim]


def _reference_f32(atom_ft, bond_ft, glob_ft, adj_b, adj_g, params):
    """Pure-f32 semantic reference (mirrors the torch module)."""
    w1, b1, w2, b2, w3, b3 = params
    mean_b = jnp.einsum('bae,bef->baf', adj_b, bond_ft)
    mean_g = jnp.einsum('bag,bgf->baf', adj_g, glob_ft)
    x = jnp.concatenate([atom_ft, mean_b, mean_g], axis=-1)
    h = _softplus(jnp.einsum('baf,fh->bah', x, w1) + b1)
    h = _softplus(jnp.einsum('bah,hk->bak', h, w2) + b2)
    return jnp.einsum('bak,ko->bao', h, w3) + b3


def _reference_mixed(atom_ft, bond_ft, glob_ft, adj_b, adj_g, params):
    """Mirrors the kernel's bf16-operand / f32-accumulate arithmetic."""
    w1, b1, w2, b2, w3, b3 = params
    fa, fb = atom_ft.shape[-1], bond_ft.shape[-1]
    bf16, f32 = jnp.bfloat16, jnp.float32
    w1a = w1[:fa].astype(bf16)
    w1b = w1[fa:fa + fb].astype(bf16)
    w1g = w1[fa + fb:].astype(bf16)
    atom, bond = atom_ft.astype(bf16), bond_ft.astype(bf16)
    glob = glob_ft.astype(bf16).astype(f32)
    mean_b = jnp.einsum('bae,bef->baf', adj_b.astype(bf16), bond,
                        preferred_element_type=f32)
    mean_g = jnp.einsum('bag,bgf->baf', adj_g.astype(f32), glob)
    h = (jnp.einsum('baf,fh->bah', atom, w1a, preferred_element_type=f32)
         + jnp.einsum('baf,fh->bah', mean_b.astype(bf16), w1b,
                      preferred_element_type=f32)
         + jnp.einsum('baf,fh->bah', mean_g.astype(bf16), w1g,
                      preferred_element_type=f32)
         + b1)
    h = _softplus(h)
    h = _softplus(jnp.einsum('bah,hk->bak', h.astype(bf16), w2.astype(bf16),
                             preferred_element_type=f32) + b2)
    return jnp.einsum('bak,ko->bao', h.astype(bf16), w3.astype(bf16),
                      preferred_element_type=f32) + b3


if __name__ == "__main__":
    key = jax.random.PRNGKey(0)

    # small batch of synthetic heterographs (padded to a common size):
    # 4 graphs, 16 atoms, 32 bonds, 2 global nodes each.
    B, n_atom, n_bond, n_glob = 4, 16, 32, 2
    in_feats = {"atom": 16, "bond": 8, "global": 8}
    out_feats = [32, 32, 24]          # num_fc_layers = 3
    in_size = in_feats["atom"] + in_feats["bond"] + in_feats["global"]

    ks = jax.random.split(key, 8)
    atom_ft = jax.random.normal(ks[0], (B, n_atom, in_feats["atom"]), jnp.float32)
    bond_ft = jax.random.normal(ks[1], (B, n_bond, in_feats["bond"]), jnp.float32)
    glob_ft = jax.random.normal(ks[2], (B, n_glob, in_feats["global"]), jnp.float32)

    # deterministic bond->atom incidence: bond b of graph g hits atoms
    # (b+g)%n_atom and (b+g+1)%n_atom; row-normalize (== DGL fn.mean).
    g_idx = jnp.arange(B)[:, None]
    b_idx = jnp.arange(n_bond)[None, :]
    a0 = (b_idx + g_idx) % n_atom
    a1 = (b_idx + g_idx + 1) % n_atom
    adj_b = (jax.nn.one_hot(a0, n_atom, axis=1)
             + jax.nn.one_hot(a1, n_atom, axis=1)).astype(jnp.float32)
    deg_b = jnp.sum(adj_b, axis=2, keepdims=True)
    adj_b = jnp.where(deg_b > 0, adj_b / jnp.maximum(deg_b, 1.0), 0.0)

    # global->atom edges: atom a of graph g listens to global (a+g)%n_glob;
    # row-normalize the same way (degree 1 here, but keep it general).
    a_idx = jnp.arange(n_atom)[None, :]
    adj_g = jax.nn.one_hot((a_idx + g_idx) % n_glob, n_glob,
                           axis=2).astype(jnp.float32)
    deg_g = jnp.sum(adj_g, axis=2, keepdims=True)
    adj_g = jnp.where(deg_g > 0, adj_g / jnp.maximum(deg_g, 1.0), 0.0)

    # deterministic MLP parameters (torch.nn.Linear-style uniform init)
    def linear_init(k, fin, fout):
        kw, kb = jax.random.split(k)
        bound = 1.0 / jnp.sqrt(fin)
        w = jax.random.uniform(kw, (fin, fout), jnp.float32, -bound, bound)
        b = jax.random.uniform(kb, (fout,), jnp.float32, -bound, bound)
        return w, b

    w1, b1 = linear_init(ks[3], in_size, out_feats[0])
    w2, b2 = linear_init(ks[4], out_feats[0], out_feats[1])
    w3, b3 = linear_init(ks[5], out_feats[1], out_feats[2])
    params = (w1, b1, w2, b2, w3, b3)

    out = atom_update_layer(atom_ft, bond_ft, glob_ft, adj_b, adj_g, params)
    out = jax.block_until_ready(out)
    assert out.shape == (B, n_atom, out_feats[-1])
    assert out.dtype == jnp.float32

    # tight check vs a JAX reference mirroring the kernel's mixed precision,
    # loose check vs the pure-f32 semantic reference (bf16 operand rounding).
    ref_mixed = _reference_mixed(atom_ft, bond_ft, glob_ft, adj_b, adj_g, params)
    ref_f32 = _reference_f32(atom_ft, bond_ft, glob_ft, adj_b, adj_g, params)
    assert jnp.allclose(out, ref_mixed, atol=1e-2, rtol=1e-2)
    assert jnp.allclose(out, ref_f32, atol=2e-1, rtol=2e-1)

    print("KERNEL_OK")
</pallas_src>

<mosaic_0001>
module attributes {stable_mosaic.version = 11 : i64} {
  func.func @atom_update_kernel(%arg0: i32, %arg1: memref<1x16x16xbf16, #tpu.memory_space<vmem>>, %arg2: memref<1x32x8xbf16, #tpu.memory_space<vmem>>, %arg3: memref<1x2x8xbf16, #tpu.memory_space<vmem>>, %arg4: memref<1x16x32xbf16, #tpu.memory_space<vmem>>, %arg5: memref<1x16x2xf32, #tpu.memory_space<vmem>>, %arg6: memref<16x32xbf16, #tpu.memory_space<vmem>>, %arg7: memref<8x32xbf16, #tpu.memory_space<vmem>>, %arg8: memref<8x32xbf16, #tpu.memory_space<vmem>>, %arg9: memref<1x32xf32, #tpu.memory_space<vmem>>, %arg10: memref<32x32xbf16, #tpu.memory_space<vmem>>, %arg11: memref<1x32xf32, #tpu.memory_space<vmem>>, %arg12: memref<32x128xbf16, #tpu.memory_space<vmem>>, %arg13: memref<1x128xf32, #tpu.memory_space<vmem>>, %arg14: memref<1x16x128xf32, #tpu.memory_space<vmem>>) attributes {dimension_semantics = [#tpu.dimension_semantics<parallel>], iteration_bounds = array<i64: 4>, scalar_prefetch = 0 : i64, scratch_operands = 0 : i64, tpu.core_type = #tpu.core_type<tc>, window_params = [{transform_indices = @transform_0, window_bounds = array<i64: 1, 16, 16>}, {transform_indices = @transform_1, window_bounds = array<i64: 1, 32, 8>}, {transform_indices = @transform_2, window_bounds = array<i64: 1, 2, 8>}, {transform_indices = @transform_3, window_bounds = array<i64: 1, 16, 32>}, {transform_indices = @transform_4, window_bounds = array<i64: 1, 16, 2>}, {pipeline_mode = #tpu.pipeline_mode<synchronous>, transform_indices = @transform_5, window_bounds = array<i64: 16, 32>}, {pipeline_mode = #tpu.pipeline_mode<synchronous>, transform_indices = @transform_6, window_bounds = array<i64: 8, 32>}, {pipeline_mode = #tpu.pipeline_mode<synchronous>, transform_indices = @transform_7, window_bounds = array<i64: 8, 32>}, {pipeline_mode = #tpu.pipeline_mode<synchronous>, transform_indices = @transform_8, window_bounds = array<i64: 1, 32>}, {pipeline_mode = #tpu.pipeline_mode<synchronous>, transform_indices = @transform_9, window_bounds = array<i64: 32, 32>}, {pipeline_mode = #tpu.pipeline_mode<synchronous>, transform_indices = @transform_10, window_bounds = array<i64: 1, 32>}, {pipeline_mode = #tpu.pipeline_mode<synchronous>, transform_indices = @transform_11, window_bounds = array<i64: 32, 128>}, {pipeline_mode = #tpu.pipeline_mode<synchronous>, transform_indices = @transform_12, window_bounds = array<i64: 1, 128>}, {transform_indices = @transform_13, window_bounds = array<i64: 1, 16, 128>}]} {
    %c0 = arith.constant 0 : index
    %c0_0 = arith.constant 0 : index
    %c0_1 = arith.constant 0 : index
    %0 = vector.load %arg1[%c0, %c0_0, %c0_1] : memref<1x16x16xbf16, #tpu.memory_space<vmem>>, vector<1x16x16xbf16>
    %1 = vector.shape_cast %0 : vector<1x16x16xbf16> to vector<16x16xbf16>
    %c0_2 = arith.constant 0 : index
    %c0_3 = arith.constant 0 : index
    %c0_4 = arith.constant 0 : index
    %2 = vector.load %arg2[%c0_2, %c0_3, %c0_4] : memref<1x32x8xbf16, #tpu.memory_space<vmem>>, vector<1x32x8xbf16>
    %3 = vector.shape_cast %2 : vector<1x32x8xbf16> to vector<32x8xbf16>
    %c0_5 = arith.constant 0 : index
    %c0_6 = arith.constant 0 : index
    %c0_7 = arith.constant 0 : index
    %4 = vector.load %arg3[%c0_5, %c0_6, %c0_7] : memref<1x2x8xbf16, #tpu.memory_space<vmem>>, vector<1x2x8xbf16>
    %5 = vector.shape_cast %4 : vector<1x2x8xbf16> to vector<2x8xbf16>
    %6 = arith.extf %5 : vector<2x8xbf16> to vector<2x8xf32>
    %c0_8 = arith.constant 0 : index
    %c0_9 = arith.constant 0 : index
    %c0_10 = arith.constant 0 : index
    %7 = vector.load %arg4[%c0_8, %c0_9, %c0_10] : memref<1x16x32xbf16, #tpu.memory_space<vmem>>, vector<1x16x32xbf16>
    %8 = vector.shape_cast %7 : vector<1x16x32xbf16> to vector<16x32xbf16>
    %c0_11 = arith.constant 0 : index
    %c0_12 = arith.constant 0 : index
    %c0_13 = arith.constant 0 : index
    %9 = vector.load %arg5[%c0_11, %c0_12, %c0_13] : memref<1x16x2xf32, #tpu.memory_space<vmem>>, vector<1x16x2xf32>
    %10 = vector.shape_cast %9 : vector<1x16x2xf32> to vector<16x2xf32>
    %cst = arith.constant dense<0.000000e+00> : vector<16x8xf32>
    %11 = tpu.matmul %8, %3, %cst {dimension_numbers = #tpu.dot_dimension_numbers<[1], [0], [0], [1], [0, 0, 1, 1], [], []>} : vector<16x32xbf16>, vector<32x8xbf16>, vector<16x8xf32> -> vector<16x8xf32>
    %12 = vector.extract_strided_slice %10 {offsets = [0, 0], sizes = [16, 1], strides = [1, 1]} : vector<16x2xf32> to vector<16x1xf32>
    %13 = vector.extract_strided_slice %6 {offsets = [0, 0], sizes = [1, 8], strides = [1, 1]} : vector<2x8xf32> to vector<1x8xf32>
    %14 = vector.broadcast %12 : vector<16x1xf32> to vector<16x8xf32>
    %15 = vector.broadcast %13 : vector<1x8xf32> to vector<16x8xf32>
    %16 = arith.mulf %14, %15 : vector<16x8xf32>
    %17 = vector.extract_strided_slice %10 {offsets = [0, 1], sizes = [16, 1], strides = [1, 1]} : vector<16x2xf32> to vector<16x1xf32>
    %18 = vector.extract_strided_slice %6 {offsets = [1, 0], sizes = [1, 8], strides = [1, 1]} : vector<2x8xf32> to vector<1x8xf32>
    %19 = vector.broadcast %17 : vector<16x1xf32> to vector<16x8xf32>
    %20 = vector.broadcast %18 : vector<1x8xf32> to vector<16x8xf32>
    %21 = arith.mulf %19, %20 : vector<16x8xf32>
    %22 = arith.addf %16, %21 : vector<16x8xf32>
    %c0_14 = arith.constant 0 : index
    %c0_15 = arith.constant 0 : index
    %23 = vector.load %arg6[%c0_14, %c0_15] : memref<16x32xbf16, #tpu.memory_space<vmem>>, vector<16x32xbf16>
    %cst_16 = arith.constant dense<0.000000e+00> : vector<16x32xf32>
    %24 = tpu.matmul %1, %23, %cst_16 {dimension_numbers = #tpu.dot_dimension_numbers<[1], [0], [0], [1], [0, 0, 1, 1], [], []>} : vector<16x16xbf16>, vector<16x32xbf16>, vector<16x32xf32> -> vector<16x32xf32>
    %25 = arith.truncf %11 : vector<16x8xf32> to vector<16x8xbf16>
    %c0_17 = arith.constant 0 : index
    %c0_18 = arith.constant 0 : index
    %26 = vector.load %arg7[%c0_17, %c0_18] : memref<8x32xbf16, #tpu.memory_space<vmem>>, vector<8x32xbf16>
    %cst_19 = arith.constant dense<0.000000e+00> : vector<16x32xf32>
    %27 = tpu.matmul %25, %26, %cst_19 {dimension_numbers = #tpu.dot_dimension_numbers<[1], [0], [0], [1], [0, 0, 1, 1], [], []>} : vector<16x8xbf16>, vector<8x32xbf16>, vector<16x32xf32> -> vector<16x32xf32>
    %28 = arith.addf %24, %27 : vector<16x32xf32>
    %29 = arith.truncf %22 : vector<16x8xf32> to vector<16x8xbf16>
    %c0_20 = arith.constant 0 : index
    %c0_21 = arith.constant 0 : index
    %30 = vector.load %arg8[%c0_20, %c0_21] : memref<8x32xbf16, #tpu.memory_space<vmem>>, vector<8x32xbf16>
    %cst_22 = arith.constant dense<0.000000e+00> : vector<16x32xf32>
    %31 = tpu.matmul %29, %30, %cst_22 {dimension_numbers = #tpu.dot_dimension_numbers<[1], [0], [0], [1], [0, 0, 1, 1], [], []>} : vector<16x8xbf16>, vector<8x32xbf16>, vector<16x32xf32> -> vector<16x32xf32>
    %32 = arith.addf %28, %31 : vector<16x32xf32>
    %c0_23 = arith.constant 0 : index
    %c0_24 = arith.constant 0 : index
    %33 = vector.load %arg9[%c0_23, %c0_24] : memref<1x32xf32, #tpu.memory_space<vmem>>, vector<1x32xf32>
    %34 = vector.broadcast %33 : vector<1x32xf32> to vector<16x32xf32>
    %35 = arith.addf %32, %34 : vector<16x32xf32>
    %cst_25 = arith.constant 0.000000e+00 : f32
    %36 = vector.broadcast %cst_25 : f32 to vector<16x32xf32>
    %37 = arith.maximumf %35, %36 : vector<16x32xf32>
    %38 = math.absf %35 : vector<16x32xf32>
    %cst_26 = arith.constant 0.000000e+00 : f32
    %39 = vector.broadcast %cst_26 : f32 to vector<16x32xf32>
    %40 = arith.subf %39, %38 : vector<16x32xf32>
    %41 = math.exp %40 : vector<16x32xf32>
    %cst_27 = arith.constant 1.000000e+00 : f32
    %42 = vector.broadcast %cst_27 : f32 to vector<16x32xf32>
    %43 = arith.addf %42, %41 : vector<16x32xf32>
    %44 = math.log %43 : vector<16x32xf32>
    %45 = arith.addf %37, %44 : vector<16x32xf32>
    %46 = arith.truncf %45 : vector<16x32xf32> to vector<16x32xbf16>
    %c0_28 = arith.constant 0 : index
    %c0_29 = arith.constant 0 : index
    %47 = vector.load %arg10[%c0_28, %c0_29] : memref<32x32xbf16, #tpu.memory_space<vmem>>, vector<32x32xbf16>
    %cst_30 = arith.constant dense<0.000000e+00> : vector<16x32xf32>
    %48 = tpu.matmul %46, %47, %cst_30 {dimension_numbers = #tpu.dot_dimension_numbers<[1], [0], [0], [1], [0, 0, 1, 1], [], []>} : vector<16x32xbf16>, vector<32x32xbf16>, vector<16x32xf32> -> vector<16x32xf32>
    %c0_31 = arith.constant 0 : index
    %c0_32 = arith.constant 0 : index
    %49 = vector.load %arg11[%c0_31, %c0_32] : memref<1x32xf32, #tpu.memory_space<vmem>>, vector<1x32xf32>
    %50 = vector.broadcast %49 : vector<1x32xf32> to vector<16x32xf32>
    %51 = arith.addf %48, %50 : vector<16x32xf32>
    %cst_33 = arith.constant 0.000000e+00 : f32
    %52 = vector.broadcast %cst_33 : f32 to vector<16x32xf32>
    %53 = arith.maximumf %51, %52 : vector<16x32xf32>
    %54 = math.absf %51 : vector<16x32xf32>
    %cst_34 = arith.constant 0.000000e+00 : f32
    %55 = vector.broadcast %cst_34 : f32 to vector<16x32xf32>
    %56 = arith.subf %55, %54 : vector<16x32xf32>
    %57 = math.exp %56 : vector<16x32xf32>
    %cst_35 = arith.constant 1.000000e+00 : f32
    %58 = vector.broadcast %cst_35 : f32 to vector<16x32xf32>
    %59 = arith.addf %58, %57 : vector<16x32xf32>
    %60 = math.log %59 : vector<16x32xf32>
    %61 = arith.addf %53, %60 : vector<16x32xf32>
    %62 = arith.truncf %61 : vector<16x32xf32> to vector<16x32xbf16>
    %c0_36 = arith.constant 0 : index
    %c0_37 = arith.constant 0 : index
    %63 = vector.load %arg12[%c0_36, %c0_37] : memref<32x128xbf16, #tpu.memory_space<vmem>>, vector<32x128xbf16>
    %cst_38 = arith.constant dense<0.000000e+00> : vector<16x128xf32>
    %64 = tpu.matmul %62, %63, %cst_38 {dimension_numbers = #tpu.dot_dimension_numbers<[1], [0], [0], [1], [0, 0, 1, 1], [], []>} : vector<16x32xbf16>, vector<32x128xbf16>, vector<16x128xf32> -> vector<16x128xf32>
    %c0_39 = arith.constant 0 : index
    %c0_40 = arith.constant 0 : index
    %65 = vector.load %arg13[%c0_39, %c0_40] : memref<1x128xf32, #tpu.memory_space<vmem>>, vector<1x128xf32>
    %66 = vector.broadcast %65 : vector<1x128xf32> to vector<16x128xf32>
    %67 = arith.addf %64, %66 : vector<16x128xf32>
    %c0_41 = arith.constant 0 : index
    %c0_42 = arith.constant 0 : index
    %c0_43 = arith.constant 0 : index
    %68 = vector.load %arg14[%c0_41, %c0_42, %c0_43] : memref<1x16x128xf32, #tpu.memory_space<vmem>>, vector<1x16x128xf32>
    %69 = vector.shape_cast %68 : vector<1x16x128xf32> to vector<16x128xf32>
    %70 = vector.shape_cast %67 : vector<16x128xf32> to vector<1x16x128xf32>
    tpu.vector_store %arg14[%c0_41, %c0_42, %c0_43], %70 {strides = array<i32>} : memref<1x16x128xf32, #tpu.memory_space<vmem>>, vector<1x16x128xf32>,
    return
  }
  func.func @transform_0(%arg0: i32) -> (i32, i32, i32) {
    %c0_i32 = arith.constant 0 : i32
    %c0_i32_0 = arith.constant 0 : i32
    %c0_i32_1 = arith.constant 0 : i32
    return %arg0, %c0_i32, %c0_i32_0 : i32, i32, i32
  }
  func.func @transform_1(%arg0: i32) -> (i32, i32, i32) {
    %c0_i32 = arith.constant 0 : i32
    %c0_i32_0 = arith.constant 0 : i32
    %c0_i32_1 = arith.constant 0 : i32
    return %arg0, %c0_i32, %c0_i32_0 : i32, i32, i32
  }
  func.func @transform_2(%arg0: i32) -> (i32, i32, i32) {
    %c0_i32 = arith.constant 0 : i32
    %c0_i32_0 = arith.constant 0 : i32
    %c0_i32_1 = arith.constant 0 : i32
    return %arg0, %c0_i32, %c0_i32_0 : i32, i32, i32
  }
  func.func @transform_3(%arg0: i32) -> (i32, i32, i32) {
    %c0_i32 = arith.constant 0 : i32
    %c0_i32_0 = arith.constant 0 : i32
    %c0_i32_1 = arith.constant 0 : i32
    return %arg0, %c0_i32, %c0_i32_0 : i32, i32, i32
  }
  func.func @transform_4(%arg0: i32) -> (i32, i32, i32) {
    %c0_i32 = arith.constant 0 : i32
    %c0_i32_0 = arith.constant 0 : i32
    %c0_i32_1 = arith.constant 0 : i32
    return %arg0, %c0_i32, %c0_i32_0 : i32, i32, i32
  }
  func.func @transform_5(%arg0: i32) -> (i32, i32) {
    %c0_i32 = arith.constant 0 : i32
    %c0_i32_0 = arith.constant 0 : i32
    %c0_i32_1 = arith.constant 0 : i32
    return %c0_i32, %c0_i32_0 : i32, i32
  }
  func.func @transform_6(%arg0: i32) -> (i32, i32) {
    %c0_i32 = arith.constant 0 : i32
    %c0_i32_0 = arith.constant 0 : i32
    %c0_i32_1 = arith.constant 0 : i32
    return %c0_i32, %c0_i32_0 : i32, i32
  }
  func.func @transform_7(%arg0: i32) -> (i32, i32) {
    %c0_i32 = arith.constant 0 : i32
    %c0_i32_0 = arith.constant 0 : i32
    %c0_i32_1 = arith.constant 0 : i32
    return %c0_i32, %c0_i32_0 : i32, i32
  }
  func.func @transform_8(%arg0: i32) -> (i32, i32) {
    %c0_i32 = arith.constant 0 : i32
    %c0_i32_0 = arith.constant 0 : i32
    %c0_i32_1 = arith.constant 0 : i32
    return %c0_i32, %c0_i32_0 : i32, i32
  }
  func.func @transform_9(%arg0: i32) -> (i32, i32) {
    %c0_i32 = arith.constant 0 : i32
    %c0_i32_0 = arith.constant 0 : i32
    %c0_i32_1 = arith.constant 0 : i32
    return %c0_i32, %c0_i32_0 : i32, i32
  }
  func.func @transform_10(%arg0: i32) -> (i32, i32) {
    %c0_i32 = arith.constant 0 : i32
    %c0_i32_0 = arith.constant 0 : i32
    %c0_i32_1 = arith.constant 0 : i32
    return %c0_i32, %c0_i32_0 : i32, i32
  }
  func.func @transform_11(%arg0: i32) -> (i32, i32) {
    %c0_i32 = arith.constant 0 : i32
    %c0_i32_0 = arith.constant 0 : i32
    %c0_i32_1 = arith.constant 0 : i32
    return %c0_i32, %c0_i32_0 : i32, i32
  }
  func.func @transform_12(%arg0: i32) -> (i32, i32) {
    %c0_i32 = arith.constant 0 : i32
    %c0_i32_0 = arith.constant 0 : i32
    %c0_i32_1 = arith.constant 0 : i32
    return %c0_i32, %c0_i32_0 : i32, i32
  }
  func.func @transform_13(%arg0: i32) -> (i32, i32, i32) {
    %c0_i32 = arith.constant 0 : i32
    %c0_i32_0 = arith.constant 0 : i32
    %c0_i32_1 = arith.constant 0 : i32
    return %arg0, %c0_i32, %c0_i32_0 : i32, i32, i32
  }
}

</mosaic_0001>

<bundles_post_ra>
// kernel: atom_update_layer.1
= control target key start
LH: loop header
LB: loop body
LE: loop exit
PB: predicated region body
PF: predicated region fallthrough
CT: control target
= control target key end

     0   :  { %18 = vsyncpa [#allocation3], 0  ;;  %s1321_s0 = inlined_call_operand.vmem [shape: bf16[4,16,16], index: 0, kind: input, shape index: {}]   ;;  %s1322_s1 = inlined_call_operand.vmem [shape: bf16[4,32,8], index: 1, kind: input, shape index: {}]   ;;  %s1323_s2 = inlined_call_operand.vmem [shape: bf16[4,2,8], index: 2, kind: input, shape index: {}]   ;;  %s1324_s3 = inlined_call_operand.vmem [shape: bf16[4,16,32], index: 3, kind: input, shape index: {}]   ;;  %s1325_s4 = inlined_call_operand.vmem [shape: f32[4,16,2], index: 4, kind: input, shape index: {}]   ;;  %s1326_s5 = inlined_call_operand.vmem [shape: bf16[16,32], index: 5, kind: input, shape index: {}]   ;;  %s1327_s6 = inlined_call_operand.vmem [shape: bf16[8,32], index: 6, kind: input, shape index: {}]   ;;  %s1328_s7 = inlined_call_operand.vmem [shape: bf16[8,32], index: 7, kind: input, shape index: {}]   ;;  %s1329_s8 = inlined_call_operand.vmem [shape: f32[1,32], index: 8, kind: input, shape index: {}]   ;;  %s1330_s9 = inlined_call_operand.vmem [shape: bf16[32,32], index: 9, kind: input, shape index: {}]   ;;  %s1331_s10 = inlined_call_operand.vmem [shape: f32[1,32], index: 10, kind: input, shape index: {}]   ;;  %s1332_s11 = inlined_call_operand.vmem [shape: bf16[32,128], index: 11, kind: input, shape index: {}]   ;;  %s1333_s12 = inlined_call_operand.vmem [shape: f32[1,128], index: 12, kind: input, shape index: {}]   ;;  %s1334_s13 = inlined_call_operand.hbm [shape: f32[4,16,128], index: 13, kind: output, shape index: {}]  }
   0x1   :  { %20 = vsyncpa [#allocation3 + $0x1], 0  ;;  %s1186_s25 = smov 0   ;;  %s1188_s26 = smov 0  }
   0x2   :  { %s1190_s27 = smov 0   ;;  %s1192_s28 = smov 0  }
   0x3 LB: > { %1339 = sst [smem:[#allocation5_spill]] %s1106_s27  ;;  %s1207_s29 = sadd.s32 4294967295, %s1110_s28   ;;  %s1110_s28 = sphi %s1192_s28, %s1346_s28   ;;  %s1106_s27 = sphi %s1190_s27, %s1348_s27   ;;  %s1102_s26 = sphi %s1188_s26, %s1350_s26   ;;  %s1098_s25 = sphi %s1186_s25, %s1349_s25  }
   0x4   : > { %s909_s30 = sadd.s32 4294967294, %s1110_s28   ;;  %s1211_s14 = sadd.s32 1, %s1110_s28  }
   0x5   : > { %1340 = sst [smem:[#allocation6_spill]] %s1211_s14  ;;  %s331_s15 = sadd.s32 1, %s1106_s27 }
   0x6   : > { %s328_s16 = ssub.s32 %s1110_s28, %s1211_s14  ;;  %p341_p0 = scmp.ne.s32.totalorder %s1106_s27, %s1102_s26 }
   0x7   : > { %p329_p1 = scmp.eq.s32.totalorder %s328_s16, 0  ;;  %p342_p2 = scmp.eq.s32.totalorder %s1207_s29, 3 }
   0x8   : > { %p347_p3 = scmp.ne.s32.totalorder %s1102_s26, %s1098_s25  ;;  %p348_p4 = scmp.eq.s32.totalorder %s909_s30, 3 }
   0x9   : > { %s1222_s17 = scalar_select %p329_p1, %s1106_s27, %s331_s15  }
   0xa   : > { %p1224_p5 = por %p342_p2, %p341_p0  ;;  %p1228_p6 = por %p348_p4, %p347_p3 }
   0xb   : > { %1341 = sst [smem:[#allocation7_spill]] %s1222_s17  ;;  %p912_p7 = scmp.ge.s32.totalorder %s1110_s28, 1 }
   0xc   : > { %s1343_s19 = scalar_select %p1228_p6, 1, 0 }
   0xd   : > { %p428_p8 = scmp.lt.s32.totalorder %s1110_s28, 5 }
   0xe   : > { %1344 = sst [smem:[#allocation8_spill]] %s1343_s19 }
   0xf   : > { %p429_p9 = pnand %p912_p7, %p428_p8 }
  0x10   : > { %p490_p10 = scmp.lt.s32.totalorder (!%p429_p9), %s1207_s29, 3  ;;  %s982_s27 = sshll.u32 (!%p429_p9), %s1207_s29, 4 }
  0x11   : > { %432 = sbr.rel (%p429_p9) target bundleno = 650 (0x28a), region = 72 }
  0x16   : > { %v1112_v0 = vmov 1   ;;  %v1113_v1 = vmov 0   ;;  %s1236_s20 = scalar_select %p490_p10, %s1207_s29, 3  ;;  %vm543_vm0 = vcmask 261120   ;;  %vm595_vm1 = vcmask 1043456   ;;  %v977_v8 = vld [vmem:[%s1326_s5] sm:$0xff] }
  0x17   : > { %1027 = vset.pattern.permute.xlu1 %v1112_v0  ;;  %1026 = vset.pattern.permute.xlu0 %v1113_v1  ;;  %v643_v7 = vld [vmem:[%s1328_s7] sm:$0xf]  ;;  %vm624_vm2 = vcmask 130048   ;;  %vm591_vm3 = vcmask 64512   ;;  %v979_v36 = vld [vmem:[%s1330_s9 + $0x8] sm:$0xff] }
  0x18   : > { %s970_s21 = sshll.u32 %s1236_s20, 4  ;;  %s969_s17 = sshll.u32 %s1236_s20, 3  ;;  %v648_v9 = vsel %vm595_vm1, %v643_v7, 0  ;;  %635 = vmatpush.bf16.msra.mxu2 %v977_v8  ;;  %v590_v12 = vld [vmem:[%s1327_s6] sm:$0xf] }
  0x19   : > { %s512_s24 = scalar_lea.vmem %s1325_s4, %s970_s21  ;;  %s499_s16 = scalar_lea.vmem %s1322_s1, %s970_s21  ;;  %657 = vmatpush.bf16.msra.mxu3 %v648_v9  ;;  %v597_v13 = vsel %vm595_vm1, %v590_v12, 0  ;;  %v1029_v35 = vld [vmem:[%s1329_s8] ss:$0 sm:$0xff] }
  0x1a   : > { %v524_v2 = vld [vmem:[%s512_s24] sm:$0xff]  ;;  %v975_v3 = vld [vmem:[%s499_s16 + $0x8] sm:$0xff]  ;;  %s507_s19 = scalar_lea.vmem %s1324_s3, %s969_s17  ;;  %606 = vmatpush.bf16.msra.mxu1 %v597_v13 }
  0x1b   : > { %575 = vperm.xlu1 %1027, %v524_v2   ;;  %563 = vperm.xlu0 %1026, %v524_v2   ;;  %v974_v4 = vld [vmem:[%s499_s16] sm:$0xff]  ;;  %v525_v5 = vld [vmem:[%s512_s24 + $0x8] sm:$0xff]  ;;  %s502_s16 = scalar_lea.vmem %s1323_s2, %s1236_s20  ;;  %s798_s24 = scalar_lea.hbm %s1334_s13, %s982_s27 }
  0x1c   : > { %553 = vmatpush.bf16.msra.mxu0 %v975_v3  ;;  %v976_v6 = vld [vmem:[%s507_s19] sm:$0xff]  ;;  %s494_s19 = scalar_lea.vmem %s1321_s0, %s969_s17  ;;  %v981_v2 = vld [vmem:[%s1332_s11 + $0x8] sm:$0xff]  ;;  %s487_s17 = sand.u32 1, %s1102_s26  }
  0x1d   : > { %v973_v10 = vld [vmem:[%s494_s19] sm:$0xff]  ;;  %776 = vmatpush.bf16.msrb.mxu2 %v981_v2  ;;  %s913_s20 = sshll.u32 %s487_s17, 4  ;;  %s801_s21 = sshll.u32 %s798_s24, 4  ;;  %s802_s21 = int_to_ptr.hbm [resolvable:$true] %s801_s21 }
  0x1e   : > { %944 = vmatmul.msk.bf16.vlgmr.msra.gmra.mxu2 %vm624_vm2, %v973_v10  ;;  %v520_v11 = vld [vmem:[%s502_s16] sm:$0x1]  ;;  %720 = vmatpush.bf16.msrb.mxu1 %v979_v36  ;;  %s489_s15 = scalar_lea.vmem [#allocation2], %s913_s20  ;;  %s787_s22 = scalar_lea.sflag [#allocation3], %s487_s17 }
  0x1f   : > { %v521_v14 = vunpack.c.l.bf16 %v520_v11  ;;  %v978_v39 = vld [vmem:[%s1330_s9] sm:$0xff]  ;;  %s799_s16 = sshll.u32 %s489_s15, 4  ;;  %s1062_s23 = sshra.s32 %s802_s21, 4  ;;  %s800_s16 = int_to_ptr.vmem [resolvable:$true] %s799_s16  ;;  %s1063_s23 = int_to_ptr.hbm [resolvable:$true] %s1062_s23 }
  0x20   : > { %554 = vmatpush.bf16.msra.mxu0 %v974_v4  ;;  %v1030_v1 = vld [vmem:[%s1331_s10] ss:$0 sm:$0xff]  ;;  %s1064_s29 = scalar_lea.hbm %s1063_s23, 16  ;;  %s1068_s20 = scalar_lea.hbm %s1334_s13, 64 }
  0x21   : > { %v582_v17 = vperm.slane %v521_v14, 1  ;;  %v571_v18 = vperm.slane %v521_v14, 0  ;;  %p1065_p11 = scmp.ne.s32.totalorder %s1063_s23, %s1064_s29  ;;  %p1069_p0 = scmp.lt.s32.totalorder %s1063_s23, %s1334_s13 }
  0x22   : > { %721 = vmatpush.bf16.msrb.mxu1 %v978_v39  ;;  %p1070_p1 = scmp.lt.s32.totalorder %s1068_s20, %s1064_s29 }
  0x23   : > { %579 = vperm.xlu1 %1027, %v525_v5   ;;  %568 = vperm.xlu0 %1026, %v525_v5   ;;  %v980_v5 = vld [vmem:[%s1332_s11] sm:$0xff]  ;;  %p1066_p12 = pnand %p1065_p11, %p1224_p5 }
  0x24   : > { %934 = vmatmul.msk.bf16.vlgmr.msra.gmra.mxu0 %vm543_vm0, %v976_v6  ;;  %777 = vmatpush.bf16.msrb.mxu2 %v980_v5  ;;  %p1071_p2 = por %p1070_p1, %p1069_p0 }
  0x25   : > { %p1067_p13 = pneg %p1066_p12 }
  0x27   : > { %p1072_p3 = pnand %p1071_p2, %p1067_p13 }
  0x2b   : > { %1028 = vset.pattern.permute.xlu0 %v1112_v0 }
  0x8d   : > { %v576_v15 = vpop.permute.xlu1 %575  ;;  %v564_v16 = vpop.permute.xlu0 %563 }
  0x8e   : > { %v583_v19 = vmul.f32 %v582_v17, %v576_v15  ;;  %v572_v20 = vmul.f32 %v571_v18, %v564_v16 }
  0x90   : > { %v585_v23 = vadd.f32 %v583_v19, %v572_v20 }
  0x95   : > { %v580_v21 = vpop.permute.xlu1 %579  ;;  %v569_v22 = vpop.permute.xlu0 %568 }
  0x96   : > { %v584_v24 = vmul.f32 %v582_v17, %v580_v21  ;;  %v573_v25 = vmul.f32 %v571_v18, %v569_v22 }
  0x98   : > { %v586_v26 = vadd.f32 %v584_v24, %v573_v25 }
  0x9a   : > { %v642_v27 = vpack.c.bf16 %v586_v26, %v585_v23 }
  0x9c   : > { %945 = vmatmul.msk.bf16.vlgmr.msra.gmra.mxu3 %vm591_vm3, %v642_v27  ;;  %v1031_v27 = vld [vmem:[%s1333_s12] ss:$0 sm:$0xff] }
  0xa1   : > { %v556_v28 = vpop.f32.mrf.mxu0  ;;  %v637_v31 = vpop.f32.mrf.mxu2 }
  0xa9   : > { %v558_v29 = vpop.f32.mrf.mxu0  ;;  %v639_v41 = vpop.f32.mrf.mxu2 }
  0xaa   : > { %v589_v30 = vpack.c.bf16 %v558_v29, %v556_v28 }
  0xac   : > { %935 = vmatmul.msk.bf16.vlgmr.msra.gmra.mxu1 %vm591_vm3, %v589_v30 }
 0x11f   : > { %v659_v32 = vpop.f32.mrf.mxu3 }
 0x127   : > { %v661_v45 = vpop.f32.mrf.mxu3 }
 0x129   : > { %v608_v33 = vpop.f32.mrf.mxu1 }
 0x12a   : > { %v638_v34 = vadd.f32 %v637_v31, %v608_v33 }
 0x12c   : > { %v664_v37 = vadd.f32 %v659_v32, %v638_v34 }
 0x12e   : > { %v670_v38 = vadd.f32 %v1029_v35, %v664_v37 }
 0x130   : > { %v674_v40 = vand.u32 2147483647, %v670_v38  ;;  %v672_v59 = vmax.f32 %v670_v38, 0.0 }
 0x131   : > { %v610_v42 = vpop.f32.mrf.mxu1 }
 0x132   : > { %v676_v43 = vsub.f32 0.0, %v674_v40  ;;  %v640_v44 = vadd.f32 %v639_v41, %v610_v42 }
 0x134   : > { %v678_v46 = vmul.f32 1.442695, %v676_v43  ;;  %v665_v47 = vadd.f32 %v661_v45, %v640_v44 }
 0x136   : > { %1032 = vpow2.f32 %v678_v46  ;;  %v671_v48 = vadd.f32 %v1029_v35, %v665_v47 }
 0x138   : > { %v675_v49 = vand.u32 2147483647, %v671_v48  ;;  %v673_v60 = vmax.f32 %v671_v48, 0.0 }
 0x13a   : > { %v677_v50 = vsub.f32 0.0, %v675_v49 }
 0x13c   : > { %v1033_v51 = vpop.eup %1032  ;;  %v680_v52 = vmul.f32 1.442695, %v677_v50 }
 0x13d   : > { %v682_v53 = vadd.f32 1.0, %v1033_v51 }
 0x13e   : > { %1034 = vpow2.f32 %v680_v52 }
 0x13f   : > { %1036 = vlog2.f32 %v682_v53 }
 0x144   : > { %v1035_v54 = vpop.eup %1034 }
 0x145   : > { %v683_v55 = vadd.f32 1.0, %v1035_v54  ;;  %v1037_v56 = vpop.eup %1036 }
 0x146   : > { %v685_v57 = vmul.f32 0.6931472, %v1037_v56 }
 0x147   : > { %1038 = vlog2.f32 %v683_v55 }
 0x148   : > { %v688_v62 = vadd.f32 %v685_v57, %v672_v59 }
 0x14d   : > { %v1039_v58 = vpop.eup %1038 }
 0x14e   : > { %v687_v61 = vmul.f32 0.6931472, %v1039_v58 }
 0x150   : > { %v689_v63 = vadd.f32 %v687_v61, %v673_v60 }
 0x152   : > { %v690_v0 = vpack.c.bf16 %v689_v63, %v688_v62 }
 0x154   : > { %954 = vmatmul.msk.bf16.vlgmr.msrb.gmra.mxu1 %vm543_vm0, %v690_v0 }
 0x1d1   : > { %v723_v3 = vpop.f32.mrf.mxu1 }
 0x1d2   : > { %v724_v4 = vadd.f32 %v1030_v1, %v723_v3 }
 0x1d4   : > { %v730_v6 = vand.u32 2147483647, %v724_v4  ;;  %v728_v21 = vmax.f32 %v724_v4, 0.0 }
 0x1d6   : > { %v732_v7 = vsub.f32 0.0, %v730_v6 }
 0x1d8   : > { %v734_v8 = vmul.f32 1.442695, %v732_v7 }
 0x1d9   : > { %v725_v9 = vpop.f32.mrf.mxu1 }
 0x1da   : > { %1040 = vpow2.f32 %v734_v8  ;;  %v726_v10 = vadd.f32 %v1030_v1, %v725_v9 }
 0x1dc   : > { %v731_v11 = vand.u32 2147483647, %v726_v10  ;;  %v729_v22 = vmax.f32 %v726_v10, 0.0 }
 0x1de   : > { %v733_v12 = vsub.f32 0.0, %v731_v11 }
 0x1e0   : > { %v1041_v13 = vpop.eup %1040  ;;  %v736_v14 = vmul.f32 1.442695, %v733_v12 }
 0x1e1   : > { %v738_v15 = vadd.f32 1.0, %v1041_v13 }
 0x1e2   : > { %1042 = vpow2.f32 %v736_v14 }
 0x1e3   : > { %1044 = vlog2.f32 %v738_v15 }
 0x1e8   : > { %v1043_v16 = vpop.eup %1042 }
 0x1e9   : > { %v739_v17 = vadd.f32 1.0, %v1043_v16  ;;  %v1045_v18 = vpop.eup %1044 }
 0x1ea   : > { %v741_v19 = vmul.f32 0.6931472, %v1045_v18 }
 0x1eb   : > { %1046 = vlog2.f32 %v739_v17 }
 0x1ec   : > { %v744_v24 = vadd.f32 %v741_v19, %v728_v21 }
 0x1f1   : > { %v1047_v20 = vpop.eup %1046 }
 0x1f2   : > { %v743_v23 = vmul.f32 0.6931472, %v1047_v20 }
 0x1f4   : > { %v745_v25 = vadd.f32 %v743_v23, %v729_v22 }
 0x1f6   : > { %v746_v26 = vpack.c.bf16 %v745_v25, %v744_v24 }
 0x1f8   : > { %963 = vmatmul.msk.bf16.vlgmr.msrb.gmra.mxu2 %vm543_vm0, %v746_v26 }
 0x27b   : > { %v779_v28 = vpop.f32.mrf.mxu2 }
 0x27c   : > { %v780_v29 = vadd.f32 %v1031_v27, %v779_v28 }
 0x27e   : > { %784 = vst [vmem:[%s489_s15] sm:$0xff] %v780_v29 }
 0x283   : > { %v781_v30 = vpop.f32.mrf.mxu2 }
 0x284   : > { %v782_v31 = vadd.f32 %v1031_v27, %v781_v30 }
 0x286   : > { %785 = vst [vmem:[%s489_s15 + $0x8] sm:$0xff] %v782_v31 }
 0x287   : > { %1075 = shalt.err (!%p1072_p3)
}
 0x288   : > { %s1114_s17 = smov 128   ;;  %s1115_s24 = smov 8  }
 0x289   : > { %983 = dma.vmem_to_hbm [thread:$0]  (%p1224_p5), %s800_s16, 256, %s802_s21, %s787_s22, %s1114_s17, %s1114_s17, %s1115_s24  }
 0x28a PF: > { %p989_p4 = scmp.ge.s32.totalorder %s1110_s28, 2  ;;  %s816_s30 = sand.u32 1, %s1098_s25  }
 0x28b   : > { %s817_s14 = scalar_lea.sflag [#allocation3], %s816_s30 }
 0x28c   : > { %p986_p7 = pnand %p989_p4, %p1228_p6 }
 0x28e   : > { %p987_p8 = pneg %p986_p7 }
 0x290   : > { %1093 = dma.done.wait (%p987_p8), %s817_s14, 256  }
 0x291   : > { %1095 = vsyncadd (%p987_p8), %s817_s14, 4294967040  ;;  %s1346_s28 = sld [smem:[#allocation6_spill]]  ;;  %s1349_s25 = smov %s1102_s26 }
 0x292   : > { %s1347_s23 = sld [smem:[#allocation5_spill]] }
 0x293   : > { %s1348_s27 = sld [smem:[#allocation7_spill]] }
 0x297   : > { %p23_p9 = scmp.ge.s32.totalorder %s1346_s28, 6  }
 0x298   : > { %s1350_s26 = smov %s1347_s23 }
 0x299   :  { %25 = sbr.rel (!%p23_p9) target bundleno = 3 (0x3), region = 119 }
 0x29e   :  { %823 = vsyncpa [#allocation3], 1 }
 0x29f   :  { %825 = vsyncpa [#allocation3 + $0x1], 1 }

</bundles_post_ra>
